<compile_context>
chip_gen: v5e
topology: v5e:2x2
jax: 0.10.0
libtpu: 0.0.40
codegen_flags: <defaults>
</compile_context>

<pallas_src>
import jax
import jax.numpy as jnp
from jax.experimental import pallas as pl
from jax.experimental.pallas import tpu as pltpu


SUB = 16  # timesteps packed along the sublane axis (bf16 tile height)


def _round_up(x, m):
    return ((x + m - 1) // m) * m


def rnn_recurrence_kernel(xproj_ref, whh_ref, h_ref):
    # xproj_ref: (Cb, B, SUB, Hp) bf16 — Cb chunks of SUB projected timesteps
    #            (bias already folded in), sublane-dense.
    # whh_ref:   (Hp, Hp) bf16 recurrence weight (MXU operand).
    # h_ref:     (B, Hp) f32 output block; constant index map -> stays resident
    #            across the whole time grid (accumulator pattern).
    @pl.when(pl.program_id(0) == 0)
    def _():
        h_ref[...] = jnp.zeros_like(h_ref)

    whh = whh_ref[...]                     # hoisted: stays in vregs all steps
    n_chunks = xproj_ref.shape[0]          # static (block shape)

    def chunk_step(c, h):
        # Dynamic index only on the leading (non-tiled) dim; one bf16->f32
        # upcast per SUB timesteps.
        x_chunk = xproj_ref[c].astype(jnp.float32)      # (B, SUB, Hp)
        for s in range(SUB):                            # bounded unroll
            # Serial critical path: bf16 MXU matmul, f32 add, f32 tanh.
            pre = x_chunk[:, s, :] + jnp.dot(
                h.astype(jnp.bfloat16), whh,
                preferred_element_type=jnp.float32)
            h = jnp.tanh(pre)
        return h

    h_ref[...] = jax.lax.fori_loop(0, n_chunks, chunk_step, h_ref[...])


def rnn_forward(tokens, emb_table, wxh, whh, bh, why, by, *, t_block=64):
    """tokens: (B, T) int32 token ids.  Returns (B, O) f32 logits."""
    B, T = tokens.shape
    E, H = wxh.shape
    O = why.shape[1]
    Hp = _round_up(H, 128)
    f32, bf16 = jnp.float32, jnp.bfloat16

    # Lane-pad the hidden dim; padded columns stay exactly zero through tanh.
    wxh_p = jnp.zeros((E, Hp), f32).at[:, :H].set(wxh.astype(f32))
    bh_p = jnp.zeros((1, Hp), f32).at[0, :H].set(bh.astype(f32))
    whh_p = jnp.zeros((Hp, Hp), f32).at[:H, :H].set(whh.astype(f32))
    whh_b = whh_p.astype(bf16)                                  # MXU operand

    # Fold the input projection + hidden bias out of the recurrence: one tiny
    # (V, E) @ (E, Hp) matmul; store the table (and hence the streamed xproj)
    # in bf16 — it only feeds an f32 add + tanh.
    proj_table = (jnp.dot(emb_table.astype(f32), wxh_p) + bh_p).astype(bf16)

    # Time blocking: SUB timesteps per sublane-dense chunk, t_block timesteps
    # per grid step.  Front-pad T with zero steps (h stays exactly 0 through
    # them) instead of degrading the block size for awkward T.
    tt = _round_up(min(t_block, _round_up(T, SUB)), SUB)
    Tp = _round_up(T, tt)
    xproj = jnp.take(proj_table, tokens, axis=0)                # (B, T, Hp) bf16
    xproj = jnp.pad(xproj, ((0, 0), (Tp - T, 0), (0, 0)))       # front pad
    xproj = xproj.reshape(B, Tp // SUB, SUB, Hp).transpose(1, 0, 2, 3)
    # xproj: (C, B, SUB, Hp) — layout plumbing done wrapper-side.

    n_chunks_blk = tt // SUB
    grid = (Tp // tt,)

    h = pl.pallas_call(
        rnn_recurrence_kernel,
        out_shape=jax.ShapeDtypeStruct((B, Hp), f32),
        grid_spec=pltpu.PrefetchScalarGridSpec(
            num_scalar_prefetch=0,
            grid=grid,
            in_specs=[
                # streamed, sublane-dense bf16 projected inputs
                pl.BlockSpec((n_chunks_blk, B, SUB, Hp),
                             lambda t: (t, 0, 0, 0)),
                # constant-index recurrence weight (bf16, fetched once)
                pl.BlockSpec((Hp, Hp), lambda t: (0, 0)),
            ],
            out_specs=pl.BlockSpec((B, Hp), lambda t: (0, 0)),
        ),
        compiler_params=pltpu.CompilerParams(
            dimension_semantics=("arbitrary",),   # time axis is serial
            vmem_limit_bytes=32 * 1024 * 1024,    # explicit; safe on v5e/v6e/v7x
        ),
    )(xproj, whh_b)

    # dropout == identity (eval mode); output head as a plain XLA matmul
    # (does not scale as a kernel-resident block at real vocab sizes).
    return jnp.dot(h[:, :H], why.astype(f32)) + by.astype(f32)[None, :]


def _xavier_uniform(key, shape):
    fan_in, fan_out = shape
    limit = jnp.sqrt(6.0 / (fan_in + fan_out))
    return jax.random.uniform(key, shape, jnp.float32, -limit, limit)


def _orthogonal(key, n):
    a = jax.random.normal(key, (n, n), jnp.float32)
    q, r = jnp.linalg.qr(a)
    q = q * jnp.sign(jnp.diag(r))[None, :]   # sign correction, like torch
    return q


if __name__ == "__main__":
    # Small, module-consistent shapes.
    vocab_size = 50
    embedding_dim = 32
    hidden_dim = 32
    output_dim = 16
    B, T = 2, 8

    key = jax.random.PRNGKey(0)
    k_emb, k_wxh, k_whh, k_why, k_tok = jax.random.split(key, 5)

    emb_table = jax.random.uniform(k_emb, (vocab_size, embedding_dim),
                                   jnp.float32, -0.1, 0.1)
    Wxh = _xavier_uniform(k_wxh, (embedding_dim, hidden_dim))
    Whh = _orthogonal(k_whh, hidden_dim)
    Why = _xavier_uniform(k_why, (hidden_dim, output_dim))
    bh = jnp.zeros((hidden_dim,), jnp.float32)
    by = jnp.zeros((output_dim,), jnp.float32)

    tokens = jax.random.randint(k_tok, (B, T), 0, vocab_size, dtype=jnp.int32)

    out = rnn_forward(tokens, emb_table, Wxh, Whh, bh, Why, by)
    out = jax.block_until_ready(out)
    assert out.shape == (B, output_dim)

    # Reference 1: pure f32 math (the original module), loose tolerance
    # because the kernel uses bf16 MXU operands.
    x_emb = jnp.take(emb_table, tokens, axis=0)
    h = jnp.zeros((B, hidden_dim), jnp.float32)
    for t in range(T):
        h = jnp.tanh(x_emb[:, t, :] @ Wxh + h @ Whh + bh)
    ref_f32 = h @ Why + by
    assert jnp.allclose(out, ref_f32, atol=5e-2, rtol=5e-2), (
        "mismatch vs f32 reference: %s" % jnp.max(jnp.abs(out - ref_f32)))

    # Reference 2: same bf16 rounding points as the kernel, tight tolerance.
    proj = (emb_table @ Wxh + bh[None, :]).astype(jnp.bfloat16)
    xr = jnp.take(proj, tokens, axis=0).astype(jnp.float32)
    whh_bref = Whh.astype(jnp.bfloat16)
    h = jnp.zeros((B, hidden_dim), jnp.float32)
    for t in range(T):
        h = jnp.tanh(xr[:, t, :] + jnp.dot(h.astype(jnp.bfloat16), whh_bref,
                                           preferred_element_type=jnp.float32))
    ref_bf16 = h @ Why + by
    assert jnp.allclose(out, ref_bf16, atol=2e-3, rtol=2e-3), (
        "mismatch vs bf16-matched reference: %s"
        % jnp.max(jnp.abs(out - ref_bf16)))

    print("KERNEL_OK")
</pallas_src>

<mosaic_0001>
module attributes {stable_mosaic.version = 11 : i64} {
  func.func @rnn_recurrence_kernel(%arg0: i32, %arg1: memref<1x2x16x128xbf16, #tpu.memory_space<vmem>>, %arg2: memref<128x128xbf16, #tpu.memory_space<vmem>>, %arg3: memref<2x128xf32, #tpu.memory_space<vmem>>) attributes {dimension_semantics = [#tpu.dimension_semantics<arbitrary>], iteration_bounds = array<i64: 1>, scalar_prefetch = 0 : i64, scratch_operands = 0 : i64, tpu.core_type = #tpu.core_type<tc>, window_params = [{transform_indices = @transform_0, window_bounds = array<i64: 1, 2, 16, 128>}, {pipeline_mode = #tpu.pipeline_mode<synchronous>, transform_indices = @transform_1, window_bounds = array<i64: 128, 128>}, {pipeline_mode = #tpu.pipeline_mode<synchronous>, transform_indices = @transform_2, window_bounds = array<i64: 2, 128>}]} {
    %c0_i32 = arith.constant 0 : i32
    %0 = arith.cmpi eq, %arg0, %c0_i32 : i32
    %1 = arith.extui %0 : i1 to i32
    %c0_i32_0 = arith.constant 0 : i32
    %2 = arith.cmpi ne, %1, %c0_i32_0 : i32
    scf.if %2 {
      %cst_25 = arith.constant 0.000000e+00 : f32
      %106 = vector.broadcast %cst_25 : f32 to vector<2x128xf32>
      %c0_26 = arith.constant 0 : index
      %c0_27 = arith.constant 0 : index
      %107 = vector.load %arg3[%c0_26, %c0_27] : memref<2x128xf32, #tpu.memory_space<vmem>>, vector<2x128xf32>
      tpu.vector_store %arg3[%c0_26, %c0_27], %106 {strides = array<i32>} : memref<2x128xf32, #tpu.memory_space<vmem>>, vector<2x128xf32>,
    } else {
    }
    %c0 = arith.constant 0 : index
    %c0_1 = arith.constant 0 : index
    %3 = vector.load %arg2[%c0, %c0_1] : memref<128x128xbf16, #tpu.memory_space<vmem>>, vector<128x128xbf16>
    %c0_2 = arith.constant 0 : index
    %c0_3 = arith.constant 0 : index
    %4 = vector.load %arg3[%c0_2, %c0_3] : memref<2x128xf32, #tpu.memory_space<vmem>>, vector<2x128xf32>
    %c0_i32_4 = arith.constant 0 : i32
    %5 = arith.index_cast %c0_i32_4 : i32 to index
    %c0_5 = arith.constant 0 : index
    %c0_6 = arith.constant 0 : index
    %c0_7 = arith.constant 0 : index
    %6 = vector.load %arg1[%5, %c0_5, %c0_6, %c0_7] : memref<1x2x16x128xbf16, #tpu.memory_space<vmem>>, vector<1x2x16x128xbf16>
    %7 = vector.shape_cast %6 : vector<1x2x16x128xbf16> to vector<2x16x128xbf16>
    %8 = arith.extf %7 : vector<2x16x128xbf16> to vector<2x16x128xf32>
    %9 = vector.extract_strided_slice %8 {offsets = [0, 0, 0], sizes = [2, 1, 128], strides = [1, 1, 1]} : vector<2x16x128xf32> to vector<2x1x128xf32>
    %10 = vector.shape_cast %9 : vector<2x1x128xf32> to vector<2x128xf32>
    %11 = arith.truncf %4 : vector<2x128xf32> to vector<2x128xbf16>
    %cst = arith.constant dense<0.000000e+00> : vector<2x128xf32>
    %12 = tpu.matmul %11, %3, %cst {dimension_numbers = #tpu.dot_dimension_numbers<[1], [0], [0], [1], [0, 0, 1, 1], [], []>} : vector<2x128xbf16>, vector<128x128xbf16>, vector<2x128xf32> -> vector<2x128xf32>
    %13 = arith.addf %10, %12 : vector<2x128xf32>
    %14 = math.tanh %13 : vector<2x128xf32>
    %15 = vector.extract_strided_slice %8 {offsets = [0, 1, 0], sizes = [2, 1, 128], strides = [1, 1, 1]} : vector<2x16x128xf32> to vector<2x1x128xf32>
    %16 = vector.shape_cast %15 : vector<2x1x128xf32> to vector<2x128xf32>
    %17 = arith.truncf %14 : vector<2x128xf32> to vector<2x128xbf16>
    %cst_8 = arith.constant dense<0.000000e+00> : vector<2x128xf32>
    %18 = tpu.matmul %17, %3, %cst_8 {dimension_numbers = #tpu.dot_dimension_numbers<[1], [0], [0], [1], [0, 0, 1, 1], [], []>} : vector<2x128xbf16>, vector<128x128xbf16>, vector<2x128xf32> -> vector<2x128xf32>
    %19 = arith.addf %16, %18 : vector<2x128xf32>
    %20 = math.tanh %19 : vector<2x128xf32>
    %21 = vector.extract_strided_slice %8 {offsets = [0, 2, 0], sizes = [2, 1, 128], strides = [1, 1, 1]} : vector<2x16x128xf32> to vector<2x1x128xf32>
    %22 = vector.shape_cast %21 : vector<2x1x128xf32> to vector<2x128xf32>
    %23 = arith.truncf %20 : vector<2x128xf32> to vector<2x128xbf16>
    %cst_9 = arith.constant dense<0.000000e+00> : vector<2x128xf32>
    %24 = tpu.matmul %23, %3, %cst_9 {dimension_numbers = #tpu.dot_dimension_numbers<[1], [0], [0], [1], [0, 0, 1, 1], [], []>} : vector<2x128xbf16>, vector<128x128xbf16>, vector<2x128xf32> -> vector<2x128xf32>
    %25 = arith.addf %22, %24 : vector<2x128xf32>
    %26 = math.tanh %25 : vector<2x128xf32>
    %27 = vector.extract_strided_slice %8 {offsets = [0, 3, 0], sizes = [2, 1, 128], strides = [1, 1, 1]} : vector<2x16x128xf32> to vector<2x1x128xf32>
    %28 = vector.shape_cast %27 : vector<2x1x128xf32> to vector<2x128xf32>
    %29 = arith.truncf %26 : vector<2x128xf32> to vector<2x128xbf16>
    %cst_10 = arith.constant dense<0.000000e+00> : vector<2x128xf32>
    %30 = tpu.matmul %29, %3, %cst_10 {dimension_numbers = #tpu.dot_dimension_numbers<[1], [0], [0], [1], [0, 0, 1, 1], [], []>} : vector<2x128xbf16>, vector<128x128xbf16>, vector<2x128xf32> -> vector<2x128xf32>
    %31 = arith.addf %28, %30 : vector<2x128xf32>
    %32 = math.tanh %31 : vector<2x128xf32>
    %33 = vector.extract_strided_slice %8 {offsets = [0, 4, 0], sizes = [2, 1, 128], strides = [1, 1, 1]} : vector<2x16x128xf32> to vector<2x1x128xf32>
    %34 = vector.shape_cast %33 : vector<2x1x128xf32> to vector<2x128xf32>
    %35 = arith.truncf %32 : vector<2x128xf32> to vector<2x128xbf16>
    %cst_11 = arith.constant dense<0.000000e+00> : vector<2x128xf32>
    %36 = tpu.matmul %35, %3, %cst_11 {dimension_numbers = #tpu.dot_dimension_numbers<[1], [0], [0], [1], [0, 0, 1, 1], [], []>} : vector<2x128xbf16>, vector<128x128xbf16>, vector<2x128xf32> -> vector<2x128xf32>
    %37 = arith.addf %34, %36 : vector<2x128xf32>
    %38 = math.tanh %37 : vector<2x128xf32>
    %39 = vector.extract_strided_slice %8 {offsets = [0, 5, 0], sizes = [2, 1, 128], strides = [1, 1, 1]} : vector<2x16x128xf32> to vector<2x1x128xf32>
    %40 = vector.shape_cast %39 : vector<2x1x128xf32> to vector<2x128xf32>
    %41 = arith.truncf %38 : vector<2x128xf32> to vector<2x128xbf16>
    %cst_12 = arith.constant dense<0.000000e+00> : vector<2x128xf32>
    %42 = tpu.matmul %41, %3, %cst_12 {dimension_numbers = #tpu.dot_dimension_numbers<[1], [0], [0], [1], [0, 0, 1, 1], [], []>} : vector<2x128xbf16>, vector<128x128xbf16>, vector<2x128xf32> -> vector<2x128xf32>
    %43 = arith.addf %40, %42 : vector<2x128xf32>
    %44 = math.tanh %43 : vector<2x128xf32>
    %45 = vector.extract_strided_slice %8 {offsets = [0, 6, 0], sizes = [2, 1, 128], strides = [1, 1, 1]} : vector<2x16x128xf32> to vector<2x1x128xf32>
    %46 = vector.shape_cast %45 : vector<2x1x128xf32> to vector<2x128xf32>
    %47 = arith.truncf %44 : vector<2x128xf32> to vector<2x128xbf16>
    %cst_13 = arith.constant dense<0.000000e+00> : vector<2x128xf32>
    %48 = tpu.matmul %47, %3, %cst_13 {dimension_numbers = #tpu.dot_dimension_numbers<[1], [0], [0], [1], [0, 0, 1, 1], [], []>} : vector<2x128xbf16>, vector<128x128xbf16>, vector<2x128xf32> -> vector<2x128xf32>
    %49 = arith.addf %46, %48 : vector<2x128xf32>
    %50 = math.tanh %49 : vector<2x128xf32>
    %51 = vector.extract_strided_slice %8 {offsets = [0, 7, 0], sizes = [2, 1, 128], strides = [1, 1, 1]} : vector<2x16x128xf32> to vector<2x1x128xf32>
    %52 = vector.shape_cast %51 : vector<2x1x128xf32> to vector<2x128xf32>
    %53 = arith.truncf %50 : vector<2x128xf32> to vector<2x128xbf16>
    %cst_14 = arith.constant dense<0.000000e+00> : vector<2x128xf32>
    %54 = tpu.matmul %53, %3, %cst_14 {dimension_numbers = #tpu.dot_dimension_numbers<[1], [0], [0], [1], [0, 0, 1, 1], [], []>} : vector<2x128xbf16>, vector<128x128xbf16>, vector<2x128xf32> -> vector<2x128xf32>
    %55 = arith.addf %52, %54 : vector<2x128xf32>
    %56 = math.tanh %55 : vector<2x128xf32>
    %57 = vector.extract_strided_slice %8 {offsets = [0, 8, 0], sizes = [2, 1, 128], strides = [1, 1, 1]} : vector<2x16x128xf32> to vector<2x1x128xf32>
    %58 = vector.shape_cast %57 : vector<2x1x128xf32> to vector<2x128xf32>
    %59 = arith.truncf %56 : vector<2x128xf32> to vector<2x128xbf16>
    %cst_15 = arith.constant dense<0.000000e+00> : vector<2x128xf32>
    %60 = tpu.matmul %59, %3, %cst_15 {dimension_numbers = #tpu.dot_dimension_numbers<[1], [0], [0], [1], [0, 0, 1, 1], [], []>} : vector<2x128xbf16>, vector<128x128xbf16>, vector<2x128xf32> -> vector<2x128xf32>
    %61 = arith.addf %58, %60 : vector<2x128xf32>
    %62 = math.tanh %61 : vector<2x128xf32>
    %63 = vector.extract_strided_slice %8 {offsets = [0, 9, 0], sizes = [2, 1, 128], strides = [1, 1, 1]} : vector<2x16x128xf32> to vector<2x1x128xf32>
    %64 = vector.shape_cast %63 : vector<2x1x128xf32> to vector<2x128xf32>
    %65 = arith.truncf %62 : vector<2x128xf32> to vector<2x128xbf16>
    %cst_16 = arith.constant dense<0.000000e+00> : vector<2x128xf32>
    %66 = tpu.matmul %65, %3, %cst_16 {dimension_numbers = #tpu.dot_dimension_numbers<[1], [0], [0], [1], [0, 0, 1, 1], [], []>} : vector<2x128xbf16>, vector<128x128xbf16>, vector<2x128xf32> -> vector<2x128xf32>
    %67 = arith.addf %64, %66 : vector<2x128xf32>
    %68 = math.tanh %67 : vector<2x128xf32>
    %69 = vector.extract_strided_slice %8 {offsets = [0, 10, 0], sizes = [2, 1, 128], strides = [1, 1, 1]} : vector<2x16x128xf32> to vector<2x1x128xf32>
    %70 = vector.shape_cast %69 : vector<2x1x128xf32> to vector<2x128xf32>
    %71 = arith.truncf %68 : vector<2x128xf32> to vector<2x128xbf16>
    %cst_17 = arith.constant dense<0.000000e+00> : vector<2x128xf32>
    %72 = tpu.matmul %71, %3, %cst_17 {dimension_numbers = #tpu.dot_dimension_numbers<[1], [0], [0], [1], [0, 0, 1, 1], [], []>} : vector<2x128xbf16>, vector<128x128xbf16>, vector<2x128xf32> -> vector<2x128xf32>
    %73 = arith.addf %70, %72 : vector<2x128xf32>
    %74 = math.tanh %73 : vector<2x128xf32>
    %75 = vector.extract_strided_slice %8 {offsets = [0, 11, 0], sizes = [2, 1, 128], strides = [1, 1, 1]} : vector<2x16x128xf32> to vector<2x1x128xf32>
    %76 = vector.shape_cast %75 : vector<2x1x128xf32> to vector<2x128xf32>
    %77 = arith.truncf %74 : vector<2x128xf32> to vector<2x128xbf16>
    %cst_18 = arith.constant dense<0.000000e+00> : vector<2x128xf32>
    %78 = tpu.matmul %77, %3, %cst_18 {dimension_numbers = #tpu.dot_dimension_numbers<[1], [0], [0], [1], [0, 0, 1, 1], [], []>} : vector<2x128xbf16>, vector<128x128xbf16>, vector<2x128xf32> -> vector<2x128xf32>
    %79 = arith.addf %76, %78 : vector<2x128xf32>
    %80 = math.tanh %79 : vector<2x128xf32>
    %81 = vector.extract_strided_slice %8 {offsets = [0, 12, 0], sizes = [2, 1, 128], strides = [1, 1, 1]} : vector<2x16x128xf32> to vector<2x1x128xf32>
    %82 = vector.shape_cast %81 : vector<2x1x128xf32> to vector<2x128xf32>
    %83 = arith.truncf %80 : vector<2x128xf32> to vector<2x128xbf16>
    %cst_19 = arith.constant dense<0.000000e+00> : vector<2x128xf32>
    %84 = tpu.matmul %83, %3, %cst_19 {dimension_numbers = #tpu.dot_dimension_numbers<[1], [0], [0], [1], [0, 0, 1, 1], [], []>} : vector<2x128xbf16>, vector<128x128xbf16>, vector<2x128xf32> -> vector<2x128xf32>
    %85 = arith.addf %82, %84 : vector<2x128xf32>
    %86 = math.tanh %85 : vector<2x128xf32>
    %87 = vector.extract_strided_slice %8 {offsets = [0, 13, 0], sizes = [2, 1, 128], strides = [1, 1, 1]} : vector<2x16x128xf32> to vector<2x1x128xf32>
    %88 = vector.shape_cast %87 : vector<2x1x128xf32> to vector<2x128xf32>
    %89 = arith.truncf %86 : vector<2x128xf32> to vector<2x128xbf16>
    %cst_20 = arith.constant dense<0.000000e+00> : vector<2x128xf32>
    %90 = tpu.matmul %89, %3, %cst_20 {dimension_numbers = #tpu.dot_dimension_numbers<[1], [0], [0], [1], [0, 0, 1, 1], [], []>} : vector<2x128xbf16>, vector<128x128xbf16>, vector<2x128xf32> -> vector<2x128xf32>
    %91 = arith.addf %88, %90 : vector<2x128xf32>
    %92 = math.tanh %91 : vector<2x128xf32>
    %93 = vector.extract_strided_slice %8 {offsets = [0, 14, 0], sizes = [2, 1, 128], strides = [1, 1, 1]} : vector<2x16x128xf32> to vector<2x1x128xf32>
    %94 = vector.shape_cast %93 : vector<2x1x128xf32> to vector<2x128xf32>
    %95 = arith.truncf %92 : vector<2x128xf32> to vector<2x128xbf16>
    %cst_21 = arith.constant dense<0.000000e+00> : vector<2x128xf32>
    %96 = tpu.matmul %95, %3, %cst_21 {dimension_numbers = #tpu.dot_dimension_numbers<[1], [0], [0], [1], [0, 0, 1, 1], [], []>} : vector<2x128xbf16>, vector<128x128xbf16>, vector<2x128xf32> -> vector<2x128xf32>
    %97 = arith.addf %94, %96 : vector<2x128xf32>
    %98 = math.tanh %97 : vector<2x128xf32>
    %99 = vector.extract_strided_slice %8 {offsets = [0, 15, 0], sizes = [2, 1, 128], strides = [1, 1, 1]} : vector<2x16x128xf32> to vector<2x1x128xf32>
    %100 = vector.shape_cast %99 : vector<2x1x128xf32> to vector<2x128xf32>
    %101 = arith.truncf %98 : vector<2x128xf32> to vector<2x128xbf16>
    %cst_22 = arith.constant dense<0.000000e+00> : vector<2x128xf32>
    %102 = tpu.matmul %101, %3, %cst_22 {dimension_numbers = #tpu.dot_dimension_numbers<[1], [0], [0], [1], [0, 0, 1, 1], [], []>} : vector<2x128xbf16>, vector<128x128xbf16>, vector<2x128xf32> -> vector<2x128xf32>
    %103 = arith.addf %100, %102 : vector<2x128xf32>
    %104 = math.tanh %103 : vector<2x128xf32>
    %c1_i32 = arith.constant 1 : i32
    %c0_23 = arith.constant 0 : index
    %c0_24 = arith.constant 0 : index
    %105 = vector.load %arg3[%c0_23, %c0_24] : memref<2x128xf32, #tpu.memory_space<vmem>>, vector<2x128xf32>
    tpu.vector_store %arg3[%c0_23, %c0_24], %104 {strides = array<i32>} : memref<2x128xf32, #tpu.memory_space<vmem>>, vector<2x128xf32>,
    return
  }
  func.func @transform_0(%arg0: i32) -> (i32, i32, i32, i32) {
    %c0_i32 = arith.constant 0 : i32
    %c0_i32_0 = arith.constant 0 : i32
    %c0_i32_1 = arith.constant 0 : i32
    %c0_i32_2 = arith.constant 0 : i32
    return %arg0, %c0_i32, %c0_i32_0, %c0_i32_1 : i32, i32, i32, i32
  }
  func.func @transform_1(%arg0: i32) -> (i32, i32) {
    %c0_i32 = arith.constant 0 : i32
    %c0_i32_0 = arith.constant 0 : i32
    %c0_i32_1 = arith.constant 0 : i32
    return %c0_i32, %c0_i32_0 : i32, i32
  }
  func.func @transform_2(%arg0: i32) -> (i32, i32) {
    %c0_i32 = arith.constant 0 : i32
    %c0_i32_0 = arith.constant 0 : i32
    %c0_i32_1 = arith.constant 0 : i32
    return %c0_i32, %c0_i32_0 : i32, i32
  }
}

</mosaic_0001>

<bundles_post_ra>
// kernel: tpu_custom_call.1
= control target key start
LH: loop header
LB: loop body
LE: loop exit
PB: predicated region body
PF: predicated region fallthrough
CT: control target
= control target key end

     0   :  { %7 = vsyncpa [#allocation3], 0  ;;  %s1092_s0 = inlined_call_operand.hbm [shape: bf16[1,2,16,128], index: 0, kind: input, shape index: {}]   ;;  %s1093_s1 = inlined_call_operand.hbm [shape: bf16[128,128], index: 1, kind: input, shape index: {}]   ;;  %s1094_s2 = inlined_call_operand.hbm [shape: f32[2,128], index: 2, kind: output, shape index: {}]  }
   0x1   :  { %8 = vsyncpa [#allocation6], 0 }
   0x2   :  { %9 = vsyncpa [#allocation4], 0  ;;  %s14_s11 = sshll.u32 %s1092_s0, 4  ;;  %s855_s12 = smov [#allocation2]   ;;  %s15_s11 = int_to_ptr.hbm [resolvable:$true] %s14_s11 }
   0x3   :  { %s16_s13 = sshll.u32 %s855_s12, 4  ;;  %s27_s16 = sshll.u32 %s1093_s1, 4  ;;  %s17_s13 = int_to_ptr.vmem [resolvable:$true] %s16_s13  ;;  %s28_s16 = int_to_ptr.hbm [resolvable:$true] %s27_s16 }
   0x4   :  { %s856_s17 = smov 64   ;;  %s857_s18 = smov 4  }
   0x5   :  { %22 = dma.hbm_to_vmem [thread:$0]  %s15_s11, 256, %s17_s13, [#allocation3], %s856_s17, %s856_s17, %s857_s18  }
   0x6   :  { %s858_s19 = smov [#allocation5]  }
   0x7   :  { %s29_s20 = sshll.u32 %s858_s19, 4  ;;  %s30_s20 = int_to_ptr.vmem [resolvable:$true] %s29_s20 }
   0x8   :  { %35 = dma.hbm_to_vmem [thread:$0]  %s28_s16, 1024, %s30_s20, [#allocation6], %s856_s17, %s856_s17, %s857_s18  }
   0x9   :  { %849 = dma.done.wait [#allocation3], 256  }
   0xa   :  { %850 = vsyncadd [#allocation3], 4294967040 }
   0xb   :  { %851 = dma.done.wait [#allocation6], 1024  }
   0xc   :  { %852 = vsyncadd [#allocation6], 4294966272  ;;  %v859_v0 = vmov 0.0   ;;  %v882_v1 = vld [vmem:[#allocation5 + $0x38] sm:$0xff]  ;;  %v885_v2 = vld [vmem:[#allocation5 + $0x30] sm:$0xff]  ;;  %vm151_vm0 = vcmask 1041409  }
   0xd   :  { %48 = vst [vmem:[#allocation7] sm:$0x3] %v859_v0  ;;  %123 = vmatpush.bf16.msra.mxu0 %v882_v1  ;;  %155 = vmatpush.bf16.msra.mxu1 %v882_v1  ;;  %v891_v3 = vld [vmem:[#allocation5 + $0x28] sm:$0xff]  ;;  %v897_v4 = vld [vmem:[#allocation5 + $0x20] sm:$0xff]  ;;  %v903_v5 = vld [vmem:[#allocation5 + $0x18] sm:$0xff]  ;;  %s860_s0 = smov [#allocation7]  }
   0xe   :  { %186 = vmatpush.bf16.msra.mxu2 %v882_v1  ;;  %219 = vmatpush.bf16.msra.mxu3 %v882_v1  ;;  %v909_v6 = vld [vmem:[#allocation5 + $0x10] sm:$0xff]  ;;  %v915_v7 = vld [vmem:[#allocation5 + $0x8] sm:$0xff]  ;;  %v921_v8 = vld [vmem:[#allocation5] sm:$0xff]  ;;  %s645_s1 = sshll.u32 %s860_s0, 4  ;;  %s647_s23 = sshll.u32 %s1094_s2, 4  ;;  %s646_s1 = int_to_ptr.vmem [resolvable:$true] %s645_s1  ;;  %s648_s23 = int_to_ptr.hbm [resolvable:$true] %s647_s23 }
   0xf   :  { %v970_v11 = vld [vmem:[#allocation2] sm:$0xff]   ;;  %v972_v12 = vld [vmem:[#allocation2 + $0x8] sm:$0xff]  }
  0x10   :  { %v975_v13 = vunpack.c.l.bf16 %v970_v11  ;;  %v978_v14 = vunpack.c.l.bf16 %v972_v12 }
  0x11   :  { %124 = vmatpush.bf16.msra.mxu0 %v885_v2  ;;  %156 = vmatpush.bf16.msra.mxu1 %v885_v2 }
  0x12   :  { %187 = vmatpush.bf16.msra.mxu2 %v885_v2  ;;  %220 = vmatpush.bf16.msra.mxu3 %v885_v2 }
  0x14   :  { %v65_v9 = vld [vmem:[#allocation7] sm:$0x3] }
  0x15   :  { %125 = vmatpush.bf16.msra.mxu0 %v891_v3  ;;  %157 = vmatpush.bf16.msra.mxu1 %v891_v3  ;;  %v74_v10 = vpack.c.bf16 %v65_v9, %v65_v9 }
  0x16   :  { %188 = vmatpush.bf16.msra.mxu2 %v891_v3  ;;  %221 = vmatpush.bf16.msra.mxu3 %v891_v3 }
  0x19   :  { %126 = vmatpush.bf16.msra.mxu0 %v897_v4  ;;  %158 = vmatpush.bf16.msra.mxu1 %v897_v4 }
  0x1a   :  { %189 = vmatpush.bf16.msra.mxu2 %v897_v4  ;;  %222 = vmatpush.bf16.msra.mxu3 %v897_v4 }
  0x1d   :  { %127 = vmatpush.bf16.msra.mxu0 %v903_v5  ;;  %159 = vmatpush.bf16.msra.mxu1 %v903_v5 }
  0x1e   :  { %190 = vmatpush.bf16.msra.mxu2 %v903_v5  ;;  %223 = vmatpush.bf16.msra.mxu3 %v903_v5 }
  0x21   :  { %128 = vmatpush.bf16.msra.mxu0 %v909_v6  ;;  %160 = vmatpush.bf16.msra.mxu1 %v909_v6 }
  0x22   :  { %191 = vmatpush.bf16.msra.mxu2 %v909_v6  ;;  %224 = vmatpush.bf16.msra.mxu3 %v909_v6 }
  0x25   :  { %129 = vmatpush.bf16.msra.mxu0 %v915_v7  ;;  %161 = vmatpush.bf16.msra.mxu1 %v915_v7 }
  0x26   :  { %192 = vmatpush.bf16.msra.mxu2 %v915_v7  ;;  %225 = vmatpush.bf16.msra.mxu3 %v915_v7 }
  0x29   :  { %130 = vmatpush.bf16.msra.mxu0 %v921_v8  ;;  %162 = vmatpush.bf16.msra.mxu1 %v921_v8 }
  0x2a   :  { %193 = vmatpush.bf16.msra.mxu2 %v921_v8  ;;  %226 = vmatpush.bf16.msra.mxu3 %v921_v8 }
  0x2c   :  { %131 = vmatmul.bf16.vlgmr.msra.gmra.mxu0 %v74_v10 }
  0x2d   :  { %252 = vmatpush.bf16.msrb.mxu0 %v882_v1  ;;  %285 = vmatpush.bf16.msrb.mxu1 %v882_v1 }
  0x2e   :  { %318 = vmatpush.bf16.msrb.mxu2 %v882_v1  ;;  %351 = vmatpush.bf16.msrb.mxu3 %v882_v1 }
  0x31   :  { %253 = vmatpush.bf16.msrb.mxu0 %v885_v2  ;;  %286 = vmatpush.bf16.msrb.mxu1 %v885_v2 }
  0x32   :  { %319 = vmatpush.bf16.msrb.mxu2 %v885_v2  ;;  %352 = vmatpush.bf16.msrb.mxu3 %v885_v2 }
  0x35   :  { %254 = vmatpush.bf16.msrb.mxu0 %v891_v3  ;;  %287 = vmatpush.bf16.msrb.mxu1 %v891_v3 }
  0x36   :  { %320 = vmatpush.bf16.msrb.mxu2 %v891_v3  ;;  %353 = vmatpush.bf16.msrb.mxu3 %v891_v3 }
  0x39   :  { %255 = vmatpush.bf16.msrb.mxu0 %v897_v4  ;;  %288 = vmatpush.bf16.msrb.mxu1 %v897_v4 }
  0x3a   :  { %321 = vmatpush.bf16.msrb.mxu2 %v897_v4  ;;  %354 = vmatpush.bf16.msrb.mxu3 %v897_v4 }
  0x3d   :  { %256 = vmatpush.bf16.msrb.mxu0 %v903_v5  ;;  %289 = vmatpush.bf16.msrb.mxu1 %v903_v5 }
  0x3e   :  { %322 = vmatpush.bf16.msrb.mxu2 %v903_v5  ;;  %355 = vmatpush.bf16.msrb.mxu3 %v903_v5 }
  0x41   :  { %257 = vmatpush.bf16.msrb.mxu0 %v909_v6  ;;  %290 = vmatpush.bf16.msrb.mxu1 %v909_v6 }
  0x42   :  { %323 = vmatpush.bf16.msrb.mxu2 %v909_v6  ;;  %356 = vmatpush.bf16.msrb.mxu3 %v909_v6 }
  0x45   :  { %258 = vmatpush.bf16.msrb.mxu0 %v915_v7  ;;  %291 = vmatpush.bf16.msrb.mxu1 %v915_v7 }
  0x46   :  { %324 = vmatpush.bf16.msrb.mxu2 %v915_v7  ;;  %357 = vmatpush.bf16.msrb.mxu3 %v915_v7 }
  0x49   :  { %259 = vmatpush.bf16.msrb.mxu0 %v921_v8  ;;  %292 = vmatpush.bf16.msrb.mxu1 %v921_v8 }
  0x4a   :  { %325 = vmatpush.bf16.msrb.mxu2 %v921_v8  ;;  %358 = vmatpush.bf16.msrb.mxu3 %v921_v8 }
  0x4d   :  { %384 = vmatpush.bf16.msra.mxu0 %v882_v1 }
  0x51   :  { %385 = vmatpush.bf16.msra.mxu0 %v885_v2 }
  0x55   :  { %386 = vmatpush.bf16.msra.mxu0 %v891_v3 }
  0x59   :  { %387 = vmatpush.bf16.msra.mxu0 %v897_v4 }
  0x5d   :  { %388 = vmatpush.bf16.msra.mxu0 %v903_v5 }
  0x61   :  { %389 = vmatpush.bf16.msra.mxu0 %v909_v6 }
  0x65   :  { %390 = vmatpush.bf16.msra.mxu0 %v915_v7 }
  0x69   :  { %391 = vmatpush.bf16.msra.mxu0 %v921_v8 }
  0xa9   :  { %v132_v15 = vpop.f32.mrf.mxu0 }
  0xaa   :  { %v137_v16 = vrot.slane %v132_v15, 1  ;;  %v140_v17 = vadd.f32 %v975_v13, %v132_v15 }
  0xac   :  { %v141_v18 = vadd.f32 %v978_v14, %v137_v16  ;;  %713 = vtanh.f32 %v140_v17 }
  0xae   :  { %715 = vtanh.f32 %v141_v18 }
  0xb1   :  { %v134_v19 = vpop.f32.mrf.mxu0 }
  0xb2   :  { %v714_v20 = vpop.eup %713 }
  0xb3   :  { %v144_v22 = vpack.c.bf16 %v714_v20, %v714_v20 }
  0xb4   :  { %v716_v21 = vpop.eup %715 }
  0xb5   :  { %v145_v23 = vpack.c.bf16 %v716_v21, %v716_v21  ;;  %v148_v25 = vunpack.c.l.b16 %v144_v22 }
  0xb7   :  { %v149_v24 = vunpack.c.l.b16 %v145_v23 }
  0xb9   :  { %v150_v26 = vrot.slane %v149_v24, 7 }
  0xbb   :  { %v152_v27 = vsel %vm151_vm0, %v150_v26, %v148_v25 }
  0xbc   :  { %v153_v28 = vpack.c.b16 %v152_v27, %v152_v27 }
  0xbe   :  { %163 = vmatmul.bf16.vlgmr.msra.gmra.mxu1 %v153_v28 }
  0xbf   :  { %415 = vmatpush.bf16.msra.mxu1 %v882_v1 }
  0xc3   :  { %416 = vmatpush.bf16.msra.mxu1 %v885_v2 }
  0xc7   :  { %417 = vmatpush.bf16.msra.mxu1 %v891_v3 }
  0xcb   :  { %418 = vmatpush.bf16.msra.mxu1 %v897_v4 }
  0xcf   :  { %419 = vmatpush.bf16.msra.mxu1 %v903_v5 }
  0xd3   :  { %420 = vmatpush.bf16.msra.mxu1 %v909_v6 }
  0xd7   :  { %421 = vmatpush.bf16.msra.mxu1 %v915_v7 }
  0xdb   :  { %422 = vmatpush.bf16.msra.mxu1 %v921_v8 }
 0x13b   :  { %v164_v29 = vpop.f32.mrf.mxu1 }
 0x13c   :  { %v169_v30 = vrot.slane %v164_v29, 7  ;;  %v173_v31 = vadd.f32 %v978_v14, %v164_v29 }
 0x13e   :  { %v172_v32 = vadd.f32 %v975_v13, %v169_v30  ;;  %717 = vtanh.f32 %v173_v31 }
 0x140   :  { %719 = vtanh.f32 %v172_v32 }
 0x143   :  { %v166_v33 = vpop.f32.mrf.mxu1 }
 0x144   :  { %v718_v34 = vpop.eup %717 }
 0x145   :  { %v177_v37 = vpack.c.bf16 %v718_v34, %v718_v34 }
 0x146   :  { %v720_v35 = vpop.eup %719 }
 0x147   :  { %v176_v36 = vpack.c.bf16 %v720_v35, %v720_v35  ;;  %v181_v39 = vunpack.c.l.b16 %v177_v37 }
 0x149   :  { %v180_v38 = vunpack.c.l.b16 %v176_v36 }
 0x14b   :  { %v182_v40 = vrot.slane %v180_v38, 1 }
 0x14d   :  { %v183_v41 = vsel %vm151_vm0, %v181_v39, %v182_v40 }
 0x14e   :  { %v184_v42 = vpack.c.b16 %v183_v41, %v183_v41 }
 0x150   :  { %194 = vmatmul.bf16.vlgmr.msra.gmra.mxu2 %v184_v42 }
 0x151   :  { %446 = vmatpush.bf16.msra.mxu2 %v882_v1 }
 0x155   :  { %447 = vmatpush.bf16.msra.mxu2 %v885_v2 }
 0x159   :  { %448 = vmatpush.bf16.msra.mxu2 %v891_v3 }
 0x15d   :  { %449 = vmatpush.bf16.msra.mxu2 %v897_v4 }
 0x161   :  { %450 = vmatpush.bf16.msra.mxu2 %v903_v5 }
 0x165   :  { %451 = vmatpush.bf16.msra.mxu2 %v909_v6 }
 0x169   :  { %452 = vmatpush.bf16.msra.mxu2 %v915_v7 }
 0x16d   :  { %453 = vmatpush.bf16.msra.mxu2 %v921_v8 }
 0x1d3   :  { %v195_v43 = vpop.f32.mrf.mxu2 }
 0x1d4   :  { %v200_v44 = vrot.slane %v195_v43, 6  ;;  %v201_v45 = vrot.slane %v195_v43, 7 }
 0x1d6   :  { %v204_v46 = vadd.f32 %v975_v13, %v200_v44  ;;  %v205_v47 = vadd.f32 %v978_v14, %v201_v45 }
 0x1d8   :  { %721 = vtanh.f32 %v204_v46 }
 0x1d9   :  { %723 = vtanh.f32 %v205_v47 }
 0x1db   :  { %v197_v48 = vpop.f32.mrf.mxu2 }
 0x1de   :  { %v722_v49 = vpop.eup %721 }
 0x1df   :  { %v724_v50 = vpop.eup %723  ;;  %v208_v51 = vpack.c.bf16 %v722_v49, %v722_v49 }
 0x1e0   :  { %v209_v52 = vpack.c.bf16 %v724_v50, %v724_v50 }
 0x1e1   :  { %v212_v53 = vunpack.c.l.b16 %v208_v51 }
 0x1e2   :  { %v213_v54 = vunpack.c.l.b16 %v209_v52 }
 0x1e3   :  { %v214_v55 = vrot.slane %v212_v53, 2 }
 0x1e4   :  { %v215_v56 = vrot.slane %v213_v54, 1 }
 0x1e6   :  { %v216_v57 = vsel %vm151_vm0, %v215_v56, %v214_v55 }
 0x1e7   :  { %v217_v58 = vpack.c.b16 %v216_v57, %v216_v57 }
 0x1e9   :  { %227 = vmatmul.bf16.vlgmr.msra.gmra.mxu3 %v217_v58 }
 0x1ea   :  { %479 = vmatpush.bf16.msra.mxu3 %v882_v1 }
 0x1ee   :  { %480 = vmatpush.bf16.msra.mxu3 %v885_v2 }
 0x1f2   :  { %481 = vmatpush.bf16.msra.mxu3 %v891_v3 }
 0x1f6   :  { %482 = vmatpush.bf16.msra.mxu3 %v897_v4 }
 0x1fa   :  { %483 = vmatpush.bf16.msra.mxu3 %v903_v5 }
 0x1fe   :  { %484 = vmatpush.bf16.msra.mxu3 %v909_v6 }
 0x202   :  { %485 = vmatpush.bf16.msra.mxu3 %v915_v7 }
 0x206   :  { %486 = vmatpush.bf16.msra.mxu3 %v921_v8 }
 0x26c   :  { %v228_v59 = vpop.f32.mrf.mxu3 }
 0x26d   :  { %v233_v60 = vrot.slane %v228_v59, 5  ;;  %v234_v61 = vrot.slane %v228_v59, 6 }
 0x26f   :  { %v237_v62 = vadd.f32 %v975_v13, %v233_v60  ;;  %v238_v63 = vadd.f32 %v978_v14, %v234_v61 }
 0x271   :  { %725 = vtanh.f32 %v237_v62 }
 0x272   :  { %727 = vtanh.f32 %v238_v63 }
 0x274   :  { %v230_v0 = vpop.f32.mrf.mxu3 }
 0x277   :  { %v726_v9 = vpop.eup %725 }
 0x278   :  { %v728_v10 = vpop.eup %727  ;;  %v241_v15 = vpack.c.bf16 %v726_v9, %v726_v9 }
 0x279   :  { %v242_v16 = vpack.c.bf16 %v728_v10, %v728_v10 }
 0x27a   :  { %v245_v17 = vunpack.c.l.b16 %v241_v15 }
 0x27b   :  { %v246_v18 = vunpack.c.l.b16 %v242_v16 }
 0x27c   :  { %v247_v19 = vrot.slane %v245_v17, 3 }
 0x27d   :  { %v248_v20 = vrot.slane %v246_v18, 2 }
 0x27f   :  { %v249_v21 = vsel %vm151_vm0, %v248_v20, %v247_v19 }
 0x280   :  { %v250_v22 = vpack.c.b16 %v249_v21, %v249_v21 }
 0x282   :  { %260 = vmatmul.bf16.vlgmr.msrb.gmra.mxu0 %v250_v22 }
 0x283   :  { %512 = vmatpush.bf16.msrb.mxu0 %v882_v1 }
 0x287   :  { %513 = vmatpush.bf16.msrb.mxu0 %v885_v2 }
 0x28b   :  { %514 = vmatpush.bf16.msrb.mxu0 %v891_v3 }
 0x28f   :  { %515 = vmatpush.bf16.msrb.mxu0 %v897_v4 }
 0x293   :  { %516 = vmatpush.bf16.msrb.mxu0 %v903_v5 }
 0x297   :  { %517 = vmatpush.bf16.msrb.mxu0 %v909_v6 }
 0x29b   :  { %518 = vmatpush.bf16.msrb.mxu0 %v915_v7 }
 0x29f   :  { %519 = vmatpush.bf16.msrb.mxu0 %v921_v8 }
 0x2ff   :  { %v261_v23 = vpop.f32.mrf.mxu0 }
 0x300   :  { %v266_v24 = vrot.slane %v261_v23, 4  ;;  %v267_v25 = vrot.slane %v261_v23, 5 }
 0x302   :  { %v270_v26 = vadd.f32 %v975_v13, %v266_v24  ;;  %v271_v27 = vadd.f32 %v978_v14, %v267_v25 }
 0x304   :  { %729 = vtanh.f32 %v270_v26 }
 0x305   :  { %731 = vtanh.f32 %v271_v27  ;;  %v1061_v27 = vunpack.c.h.bf16 %v970_v11 }
 0x307   :  { %v263_v28 = vpop.f32.mrf.mxu0 }
 0x30a   :  { %v730_v29 = vpop.eup %729 }
 0x30b   :  { %v732_v30 = vpop.eup %731  ;;  %v274_v31 = vpack.c.bf16 %v730_v29, %v730_v29 }
 0x30c   :  { %v275_v32 = vpack.c.bf16 %v732_v30, %v732_v30 }
 0x30d   :  { %v278_v33 = vunpack.c.l.b16 %v274_v31 }
 0x30e   :  { %v279_v34 = vunpack.c.l.b16 %v275_v32 }
 0x30f   :  { %v280_v35 = vrot.slane %v278_v33, 4 }
 0x310   :  { %v281_v36 = vrot.slane %v279_v34, 3 }
 0x312   :  { %v282_v37 = vsel %vm151_vm0, %v281_v36, %v280_v35 }
 0x313   :  { %v283_v38 = vpack.c.b16 %v282_v37, %v282_v37 }
 0x315   :  { %293 = vmatmul.bf16.vlgmr.msrb.gmra.mxu1 %v283_v38 }
 0x316   :  { %545 = vmatpush.bf16.msrb.mxu1 %v882_v1 }
 0x31a   :  { %546 = vmatpush.bf16.msrb.mxu1 %v885_v2 }
 0x31e   :  { %547 = vmatpush.bf16.msrb.mxu1 %v891_v3 }
 0x322   :  { %548 = vmatpush.bf16.msrb.mxu1 %v897_v4 }
 0x326   :  { %549 = vmatpush.bf16.msrb.mxu1 %v903_v5 }
 0x32a   :  { %550 = vmatpush.bf16.msrb.mxu1 %v909_v6 }
 0x32e   :  { %551 = vmatpush.bf16.msrb.mxu1 %v915_v7 }
 0x332   :  { %552 = vmatpush.bf16.msrb.mxu1 %v921_v8 }
 0x392   :  { %v294_v39 = vpop.f32.mrf.mxu1 }
 0x393   :  { %v299_v40 = vrot.slane %v294_v39, 3  ;;  %v300_v41 = vrot.slane %v294_v39, 4 }
 0x395   :  { %v303_v42 = vadd.f32 %v975_v13, %v299_v40  ;;  %v304_v43 = vadd.f32 %v978_v14, %v300_v41 }
 0x397   :  { %733 = vtanh.f32 %v303_v42 }
 0x398   :  { %735 = vtanh.f32 %v304_v43 }
 0x39a   :  { %v296_v44 = vpop.f32.mrf.mxu1 }
 0x39d   :  { %v734_v45 = vpop.eup %733 }
 0x39e   :  { %v736_v46 = vpop.eup %735  ;;  %v307_v47 = vpack.c.bf16 %v734_v45, %v734_v45 }
 0x39f   :  { %v308_v48 = vpack.c.bf16 %v736_v46, %v736_v46 }
 0x3a0   :  { %v311_v49 = vunpack.c.l.b16 %v307_v47 }
 0x3a1   :  { %v312_v50 = vunpack.c.l.b16 %v308_v48 }
 0x3a2   :  { %v313_v51 = vrot.slane %v311_v49, 5 }
 0x3a3   :  { %v314_v52 = vrot.slane %v312_v50, 4 }
 0x3a5   :  { %v315_v53 = vsel %vm151_vm0, %v314_v52, %v313_v51 }
 0x3a6   :  { %v316_v54 = vpack.c.b16 %v315_v53, %v315_v53 }
 0x3a8   :  { %326 = vmatmul.bf16.vlgmr.msrb.gmra.mxu2 %v316_v54 }
 0x3a9   :  { %578 = vmatpush.bf16.msrb.mxu2 %v882_v1 }
 0x3ad   :  { %579 = vmatpush.bf16.msrb.mxu2 %v885_v2 }
 0x3b1   :  { %580 = vmatpush.bf16.msrb.mxu2 %v891_v3 }
 0x3b5   :  { %581 = vmatpush.bf16.msrb.mxu2 %v897_v4 }
 0x3b9   :  { %582 = vmatpush.bf16.msrb.mxu2 %v903_v5 }
 0x3bd   :  { %583 = vmatpush.bf16.msrb.mxu2 %v909_v6 }
 0x3c1   :  { %584 = vmatpush.bf16.msrb.mxu2 %v915_v7 }
 0x3c5   :  { %585 = vmatpush.bf16.msrb.mxu2 %v921_v8 }
 0x42b   :  { %v327_v55 = vpop.f32.mrf.mxu2 }
 0x42c   :  { %v332_v56 = vrot.slane %v327_v55, 2  ;;  %v333_v57 = vrot.slane %v327_v55, 3 }
 0x42e   :  { %v336_v58 = vadd.f32 %v975_v13, %v332_v56  ;;  %v337_v59 = vadd.f32 %v978_v14, %v333_v57 }
 0x430   :  { %737 = vtanh.f32 %v336_v58 }
 0x431   :  { %739 = vtanh.f32 %v337_v59 }
 0x433   :  { %v329_v60 = vpop.f32.mrf.mxu2 }
 0x436   :  { %v738_v61 = vpop.eup %737 }
 0x437   :  { %v740_v62 = vpop.eup %739  ;;  %v340_v63 = vpack.c.bf16 %v738_v61, %v738_v61 }
 0x438   :  { %v341_v0 = vpack.c.bf16 %v740_v62, %v740_v62 }
 0x439   :  { %v344_v9 = vunpack.c.l.b16 %v340_v63 }
 0x43a   :  { %v345_v10 = vunpack.c.l.b16 %v341_v0 }
 0x43b   :  { %v346_v15 = vrot.slane %v344_v9, 6 }
 0x43c   :  { %v347_v16 = vrot.slane %v345_v10, 5 }
 0x43e   :  { %v348_v17 = vsel %vm151_vm0, %v347_v16, %v346_v15 }
 0x43f   :  { %v349_v18 = vpack.c.b16 %v348_v17, %v348_v17 }
 0x441   :  { %359 = vmatmul.bf16.vlgmr.msrb.gmra.mxu3 %v349_v18 }
 0x442   :  { %611 = vmatpush.bf16.msrb.mxu3 %v882_v1 }
 0x446   :  { %612 = vmatpush.bf16.msrb.mxu3 %v885_v2 }
 0x44a   :  { %613 = vmatpush.bf16.msrb.mxu3 %v891_v3 }
 0x44e   :  { %614 = vmatpush.bf16.msrb.mxu3 %v897_v4 }
 0x452   :  { %615 = vmatpush.bf16.msrb.mxu3 %v903_v5 }
 0x456   :  { %616 = vmatpush.bf16.msrb.mxu3 %v909_v6 }
 0x45a   :  { %617 = vmatpush.bf16.msrb.mxu3 %v915_v7 }
 0x45e   :  { %618 = vmatpush.bf16.msrb.mxu3 %v921_v8 }
 0x4c4   :  { %v360_v19 = vpop.f32.mrf.mxu3 }
 0x4c5   :  { %v365_v20 = vrot.slane %v360_v19, 1  ;;  %v366_v21 = vrot.slane %v360_v19, 2 }
 0x4c7   :  { %v369_v22 = vadd.f32 %v975_v13, %v365_v20  ;;  %v370_v1 = vadd.f32 %v978_v14, %v366_v21  ;;  %v1064_v13 = vunpack.c.h.bf16 %v972_v12 }
 0x4c9   :  { %741 = vtanh.f32 %v369_v22 }
 0x4ca   :  { %743 = vtanh.f32 %v370_v1 }
 0x4cc   :  { %v362_v2 = vpop.f32.mrf.mxu3 }
 0x4cf   :  { %v742_v3 = vpop.eup %741 }
 0x4d0   :  { %v744_v4 = vpop.eup %743  ;;  %v373_v23 = vpack.c.bf16 %v742_v3, %v742_v3 }
 0x4d1   :  { %v374_v5 = vpack.c.bf16 %v744_v4, %v744_v4 }
 0x4d2   :  { %v377_v24 = vunpack.c.l.b16 %v373_v23 }
 0x4d3   :  { %v378_v6 = vunpack.c.l.b16 %v374_v5 }
 0x4d4   :  { %v379_v25 = vrot.slane %v377_v24, 7 }
 0x4d5   :  { %v380_v7 = vrot.slane %v378_v6, 6 }
 0x4d7   :  { %v381_v8 = vsel %vm151_vm0, %v380_v7, %v379_v25 }
 0x4d8   :  { %v382_v26 = vpack.c.b16 %v381_v8, %v381_v8 }
 0x4da   :  { %392 = vmatmul.bf16.vlgmr.msra.gmra.mxu0 %v382_v26 }
 0x557   :  { %v393_v14 = vpop.f32.mrf.mxu0 }
 0x558   :  { %v398_v28 = vrot.slane %v393_v14, 1  ;;  %v401_v29 = vadd.f32 %v1061_v27, %v393_v14 }
 0x55a   :  { %v402_v30 = vadd.f32 %v1064_v13, %v398_v28  ;;  %745 = vtanh.f32 %v401_v29 }
 0x55c   :  { %747 = vtanh.f32 %v402_v30 }
 0x55f   :  { %v395_v31 = vpop.f32.mrf.mxu0 }
 0x560   :  { %v746_v32 = vpop.eup %745 }
 0x561   :  { %v405_v34 = vpack.c.bf16 %v746_v32, %v746_v32 }
 0x562   :  { %v748_v33 = vpop.eup %747 }
 0x563   :  { %v406_v35 = vpack.c.bf16 %v748_v33, %v748_v33  ;;  %v409_v37 = vunpack.c.l.b16 %v405_v34 }
 0x565   :  { %v410_v36 = vunpack.c.l.b16 %v406_v35 }
 0x567   :  { %v411_v11 = vrot.slane %v410_v36, 7 }
 0x569   :  { %v412_v38 = vsel %vm151_vm0, %v411_v11, %v409_v37 }
 0x56a   :  { %v413_v12 = vpack.c.b16 %v412_v38, %v412_v38 }
 0x56c   :  { %423 = vmatmul.bf16.vlgmr.msra.gmra.mxu1 %v413_v12 }
 0x5e9   :  { %v424_v39 = vpop.f32.mrf.mxu1 }
 0x5ea   :  { %v429_v40 = vrot.slane %v424_v39, 7  ;;  %v433_v41 = vadd.f32 %v1064_v13, %v424_v39 }
 0x5ec   :  { %v432_v42 = vadd.f32 %v1061_v27, %v429_v40  ;;  %749 = vtanh.f32 %v433_v41 }
 0x5ee   :  { %751 = vtanh.f32 %v432_v42 }
 0x5f1   :  { %v426_v43 = vpop.f32.mrf.mxu1 }
 0x5f2   :  { %v750_v44 = vpop.eup %749 }
 0x5f3   :  { %v437_v47 = vpack.c.bf16 %v750_v44, %v750_v44 }
 0x5f4   :  { %v752_v45 = vpop.eup %751 }
 0x5f5   :  { %v436_v46 = vpack.c.bf16 %v752_v45, %v752_v45  ;;  %v441_v49 = vunpack.c.l.b16 %v437_v47 }
 0x5f7   :  { %v440_v48 = vunpack.c.l.b16 %v436_v46 }
 0x5f9   :  { %v442_v50 = vrot.slane %v440_v48, 1 }
 0x5fb   :  { %v443_v51 = vsel %vm151_vm0, %v441_v49, %v442_v50 }
 0x5fc   :  { %v444_v52 = vpack.c.b16 %v443_v51, %v443_v51 }
 0x5fe   :  { %454 = vmatmul.bf16.vlgmr.msra.gmra.mxu2 %v444_v52 }
 0x681   :  { %v455_v53 = vpop.f32.mrf.mxu2 }
 0x682   :  { %v460_v54 = vrot.slane %v455_v53, 6  ;;  %v461_v55 = vrot.slane %v455_v53, 7 }
 0x684   :  { %v464_v56 = vadd.f32 %v1061_v27, %v460_v54  ;;  %v465_v57 = vadd.f32 %v1064_v13, %v461_v55 }
 0x686   :  { %753 = vtanh.f32 %v464_v56 }
 0x687   :  { %755 = vtanh.f32 %v465_v57 }
 0x689   :  { %v457_v58 = vpop.f32.mrf.mxu2 }
 0x68c   :  { %v754_v59 = vpop.eup %753 }
 0x68d   :  { %v756_v60 = vpop.eup %755  ;;  %v468_v61 = vpack.c.bf16 %v754_v59, %v754_v59 }
 0x68e   :  { %v469_v62 = vpack.c.bf16 %v756_v60, %v756_v60 }
 0x68f   :  { %v472_v63 = vunpack.c.l.b16 %v468_v61 }
 0x690   :  { %v473_v0 = vunpack.c.l.b16 %v469_v62 }
 0x691   :  { %v474_v9 = vrot.slane %v472_v63, 2 }
 0x692   :  { %v475_v10 = vrot.slane %v473_v0, 1 }
 0x694   :  { %v476_v15 = vsel %vm151_vm0, %v475_v10, %v474_v9 }
 0x695   :  { %v477_v16 = vpack.c.b16 %v476_v15, %v476_v15 }
 0x697   :  { %487 = vmatmul.bf16.vlgmr.msra.gmra.mxu3 %v477_v16 }
 0x71a   :  { %v488_v17 = vpop.f32.mrf.mxu3 }
 0x71b   :  { %v493_v18 = vrot.slane %v488_v17, 5  ;;  %v494_v19 = vrot.slane %v488_v17, 6 }
 0x71d   :  { %v497_v20 = vadd.f32 %v1061_v27, %v493_v18  ;;  %v498_v21 = vadd.f32 %v1064_v13, %v494_v19 }
 0x71f   :  { %757 = vtanh.f32 %v497_v20 }
 0x720   :  { %759 = vtanh.f32 %v498_v21 }
 0x722   :  { %v490_v22 = vpop.f32.mrf.mxu3 }
 0x725   :  { %v758_v1 = vpop.eup %757 }
 0x726   :  { %v760_v2 = vpop.eup %759  ;;  %v501_v3 = vpack.c.bf16 %v758_v1, %v758_v1 }
 0x727   :  { %v502_v4 = vpack.c.bf16 %v760_v2, %v760_v2 }
 0x728   :  { %v505_v23 = vunpack.c.l.b16 %v501_v3 }
 0x729   :  { %v506_v5 = vunpack.c.l.b16 %v502_v4 }
 0x72a   :  { %v507_v24 = vrot.slane %v505_v23, 3 }
 0x72b   :  { %v508_v6 = vrot.slane %v506_v5, 2 }
 0x72d   :  { %v509_v25 = vsel %vm151_vm0, %v508_v6, %v507_v24 }
 0x72e   :  { %v510_v7 = vpack.c.b16 %v509_v25, %v509_v25 }
 0x730   :  { %520 = vmatmul.bf16.vlgmr.msrb.gmra.mxu0 %v510_v7 }
 0x7ad   :  { %v521_v8 = vpop.f32.mrf.mxu0 }
 0x7ae   :  { %v526_v26 = vrot.slane %v521_v8, 4  ;;  %v527_v14 = vrot.slane %v521_v8, 5 }
 0x7b0   :  { %v530_v28 = vadd.f32 %v1061_v27, %v526_v26  ;;  %v531_v29 = vadd.f32 %v1064_v13, %v527_v14 }
 0x7b2   :  { %761 = vtanh.f32 %v530_v28 }
 0x7b3   :  { %763 = vtanh.f32 %v531_v29 }
 0x7b5   :  { %v523_v30 = vpop.f32.mrf.mxu0 }
 0x7b8   :  { %v762_v31 = vpop.eup %761 }
 0x7b9   :  { %v764_v32 = vpop.eup %763  ;;  %v534_v33 = vpack.c.bf16 %v762_v31, %v762_v31 }
 0x7ba   :  { %v535_v34 = vpack.c.bf16 %v764_v32, %v764_v32 }
 0x7bb   :  { %v538_v35 = vunpack.c.l.b16 %v534_v33 }
 0x7bc   :  { %v539_v36 = vunpack.c.l.b16 %v535_v34 }
 0x7bd   :  { %v540_v37 = vrot.slane %v538_v35, 4 }
 0x7be   :  { %v541_v11 = vrot.slane %v539_v36, 3 }
 0x7c0   :  { %v542_v38 = vsel %vm151_vm0, %v541_v11, %v540_v37 }
 0x7c1   :  { %v543_v12 = vpack.c.b16 %v542_v38, %v542_v38 }
 0x7c3   :  { %553 = vmatmul.bf16.vlgmr.msrb.gmra.mxu1 %v543_v12 }
 0x840   :  { %v554_v39 = vpop.f32.mrf.mxu1 }
 0x841   :  { %v559_v40 = vrot.slane %v554_v39, 3  ;;  %v560_v41 = vrot.slane %v554_v39, 4 }
 0x843   :  { %v563_v42 = vadd.f32 %v1061_v27, %v559_v40  ;;  %v564_v43 = vadd.f32 %v1064_v13, %v560_v41 }
 0x845   :  { %765 = vtanh.f32 %v563_v42 }
 0x846   :  { %767 = vtanh.f32 %v564_v43 }
 0x848   :  { %v556_v44 = vpop.f32.mrf.mxu1 }
 0x84b   :  { %v766_v45 = vpop.eup %765 }
 0x84c   :  { %v768_v46 = vpop.eup %767  ;;  %v567_v47 = vpack.c.bf16 %v766_v45, %v766_v45 }
 0x84d   :  { %v568_v48 = vpack.c.bf16 %v768_v46, %v768_v46 }
 0x84e   :  { %v571_v49 = vunpack.c.l.b16 %v567_v47 }
 0x84f   :  { %v572_v50 = vunpack.c.l.b16 %v568_v48 }
 0x850   :  { %v573_v51 = vrot.slane %v571_v49, 5 }
 0x851   :  { %v574_v52 = vrot.slane %v572_v50, 4 }
 0x853   :  { %v575_v53 = vsel %vm151_vm0, %v574_v52, %v573_v51 }
 0x854   :  { %v576_v54 = vpack.c.b16 %v575_v53, %v575_v53 }
 0x856   :  { %586 = vmatmul.bf16.vlgmr.msrb.gmra.mxu2 %v576_v54 }
 0x8d9   :  { %v587_v55 = vpop.f32.mrf.mxu2 }
 0x8da   :  { %v592_v56 = vrot.slane %v587_v55, 2  ;;  %v593_v57 = vrot.slane %v587_v55, 3 }
 0x8dc   :  { %v596_v58 = vadd.f32 %v1061_v27, %v592_v56  ;;  %v597_v59 = vadd.f32 %v1064_v13, %v593_v57 }
 0x8de   :  { %769 = vtanh.f32 %v596_v58 }
 0x8df   :  { %771 = vtanh.f32 %v597_v59 }
 0x8e1   :  { %v589_v60 = vpop.f32.mrf.mxu2 }
 0x8e4   :  { %v770_v61 = vpop.eup %769 }
 0x8e5   :  { %v772_v62 = vpop.eup %771  ;;  %v600_v63 = vpack.c.bf16 %v770_v61, %v770_v61 }
 0x8e6   :  { %v601_v0 = vpack.c.bf16 %v772_v62, %v772_v62 }
 0x8e7   :  { %v604_v9 = vunpack.c.l.b16 %v600_v63 }
 0x8e8   :  { %v605_v10 = vunpack.c.l.b16 %v601_v0 }
 0x8e9   :  { %v606_v15 = vrot.slane %v604_v9, 6 }
 0x8ea   :  { %v607_v16 = vrot.slane %v605_v10, 5 }
 0x8ec   :  { %v608_v17 = vsel %vm151_vm0, %v607_v16, %v606_v15 }
 0x8ed   :  { %v609_v18 = vpack.c.b16 %v608_v17, %v608_v17 }
 0x8ef   :  { %619 = vmatmul.bf16.vlgmr.msrb.gmra.mxu3 %v609_v18 }
 0x972   :  { %v620_v19 = vpop.f32.mrf.mxu3 }
 0x973   :  { %v625_v20 = vrot.slane %v620_v19, 1  ;;  %v626_v21 = vrot.slane %v620_v19, 2 }
 0x975   :  { %v629_v22 = vadd.f32 %v1061_v27, %v625_v20  ;;  %v630_v1 = vadd.f32 %v1064_v13, %v626_v21 }
 0x977   :  { %773 = vtanh.f32 %v629_v22 }
 0x978   :  { %775 = vtanh.f32 %v630_v1 }
 0x97a   :  { %v622_v2 = vpop.f32.mrf.mxu3 }
 0x97d   :  { %v774_v3 = vpop.eup %773 }
 0x97e   :  { %v776_v4 = vpop.eup %775  ;;  %638 = vst [vmem:[#allocation7 - $0x7] sm:$0x80] %v774_v3 }
 0x97f   :  { %v635_v23 = vrot.slane %v776_v4, 7 }
 0x981   :  { %639 = vst [vmem:[#allocation7 + $0x1] sm:$0x1] %v635_v23 }
 0x982   :  { %650 = dma.vmem_to_hbm [thread:$0]  %s646_s1, 32, %s648_s23, [#allocation4]  }
 0x983   :  { %853 = dma.done.wait [#allocation4], 32  }
 0x984   :  { %854 = vsyncadd [#allocation4], 4294967264 }
 0x985   :  { %655 = vsyncpa [#allocation3], 1 }
 0x986   :  { %656 = vsyncpa [#allocation6], 1 }
 0x987   :  { %657 = vsyncpa [#allocation4], 1 }

</bundles_post_ra>
